<compile_context>
chip_gen: v7x
topology: tpu7x:2x2x1
jax: 0.10.0
libtpu: 0.0.40
codegen_flags: <defaults>
</compile_context>

<pallas_src>
import jax
import jax.numpy as jnp
from jax import lax
from jax.experimental import pallas as pl
from jax.experimental.pallas import tpu as pltpu


def _rnn_kernel(x_ref,      # (T, TB, I)  time-major input, one batch block
                wih0_ref,   # (I, H)      W_ih0^T
                b0_ref,     # (1, H)      b_ih0 + b_hh0
                whh0_ref,   # (H, H)      W_hh0^T
                w12_ref,    # (4, H, H)   [W_ih1^T, W_hh1^T, W_ih2^T, W_hh2^T]
                b12_ref,    # (2, 1, H)   fused biases for layers 1, 2
                fcw_ref,    # (1, H) if O == 1 else (H, O)
                fcb_ref,    # (1, O)
                out_ref,    # (TB, O)
                u0_ref):    # scratch (T, TB, H): precomputed layer-0 input proj.
    T, TB, I = x_ref.shape
    H = whh0_ref.shape[0]
    O = out_ref.shape[1]

    # ---- pre-loop: time-parallel layer-0 input projection (bias added once) ----
    x = x_ref[...]                                   # (T, TB, I)
    wih0 = wih0_ref[...]                             # (I, H)
    b0 = b0_ref[...]                                 # (1, H)
    if I < 8:
        # Tiny contraction depth: VPU broadcast multiplies instead of a K<8 MXU pass.
        u0 = x[:, :, 0:1] * wih0[0:1, :] + b0        # (T, TB, H)
        for i in range(1, I):
            u0 = u0 + x[:, :, i:i + 1] * wih0[i:i + 1, :]
    else:
        u0 = lax.dot_general(x, wih0, (((2,), (0,)), ((), ())),
                             preferred_element_type=jnp.float32) + b0
    u0_ref[...] = u0

    # ---- hoist loop-invariant loads / broadcasts out of the recurrence ----
    whh0 = whh0_ref[...]
    wih1 = w12_ref[0]
    whh1 = w12_ref[1]
    wih2 = w12_ref[2]
    whh2 = w12_ref[3]
    b1 = jnp.broadcast_to(b12_ref[0], (TB, H))
    b2 = jnp.broadcast_to(b12_ref[1], (TB, H))

    # ---- t = 0: previous hidden states are zero, so recurrent halves vanish ----
    h0 = jnp.tanh(u0_ref[0])
    h1 = jnp.tanh(jnp.dot(h0, wih1, preferred_element_type=jnp.float32) + b1)
    h2 = jnp.tanh(jnp.dot(h1, wih2, preferred_element_type=jnp.float32) + b2)

    # ---- t = 1 .. T-1, fully unrolled with static slab indices into u0. ----
    # Un-fused matmuls: each recurrent half (h? @ W_hh?) depends only on the
    # previous timestep, so under full unroll the dependence DAG is a wavefront
    # (layer0@t+1 || layer1@t || layer2@t-1); the LLO scheduler exploits it.
    # TODO(synk): cap the unroll / move T onto a grid axis once TB*H carries
    # exceed a few vregs.
    for t in range(1, T):
        r0 = jnp.dot(h0, whh0, preferred_element_type=jnp.float32)
        r1 = jnp.dot(h1, whh1, preferred_element_type=jnp.float32)
        r2 = jnp.dot(h2, whh2, preferred_element_type=jnp.float32)
        h0 = jnp.tanh(u0_ref[t] + r0)
        h1 = jnp.tanh(jnp.dot(h0, wih1, preferred_element_type=jnp.float32) + r1 + b1)
        h2 = jnp.tanh(jnp.dot(h1, wih2, preferred_element_type=jnp.float32) + r2 + b2)

    # ---- fc head on the last top-layer state. O tiny -> VPU mul + lane sum. ----
    fcw = fcw_ref[...]
    if O == 1:
        out_ref[...] = jnp.sum(h2 * fcw, axis=-1, keepdims=True) + fcb_ref[...]
    else:
        out_ref[...] = (jnp.dot(h2, fcw, preferred_element_type=jnp.float32)
                        + fcb_ref[...])


def rnn_forward(x, params, *, batch_block=None):
    """x: (B, T, I) float32 (PyTorch batch_first). Returns fc(rnn(x)[:, -1]) -> (B, O)."""
    B, T, I = x.shape
    H = params["w_hh0"].shape[0]
    O = params["fc_w"].shape[0]

    TB = batch_block or B
    assert B % TB == 0
    # (8,128) tiling: the batch tile must be the full batch or a multiple of 8.
    assert TB == B or TB % 8 == 0

    # Layout plumbing only: time-major input.
    x_tm = jnp.transpose(x, (1, 0, 2))                               # (T, B, I)

    wih0 = params["w_ih0"].T                                         # (I, H)
    b0 = (params["b_ih0"] + params["b_hh0"]).reshape(1, H)
    whh0 = params["w_hh0"].T                                         # (H, H)

    # Separate (un-fused) per-layer weights, stacked into one buffer so the
    # pallas_call moves fewer arrays; indexed with static leading indices in-kernel.
    w12 = jnp.stack([params["w_ih1"].T, params["w_hh1"].T,
                     params["w_ih2"].T, params["w_hh2"].T], axis=0)  # (4, H, H)
    b12 = jnp.stack([(params["b_ih1"] + params["b_hh1"]).reshape(1, H),
                     (params["b_ih2"] + params["b_hh2"]).reshape(1, H)],
                    axis=0)                                          # (2, 1, H)

    # fc head: pre-transposed in the wrapper (no in-kernel .T).
    fcw = params["fc_w"] if O == 1 else params["fc_w"].T             # (1,H) or (H,O)
    fcb = params["fc_b"].reshape(1, O)

    grid = (B // TB,)

    def full_spec(arr):
        nd = arr.ndim
        shape = arr.shape
        return pl.BlockSpec(shape, lambda b: (0,) * nd)

    in_specs = [
        pl.BlockSpec((T, TB, I), lambda b: (0, b, 0)),   # x: blocked over batch
        full_spec(wih0), full_spec(b0), full_spec(whh0),
        full_spec(w12), full_spec(b12), full_spec(fcw), full_spec(fcb),
    ]
    out_spec = pl.BlockSpec((TB, O), lambda b: (b, 0))

    flops = (2 * T * B * I * H                 # layer-0 input projection
             + T * 2 * B * H * H               # layer-0 recurrent matmul
             + T * 8 * B * H * H               # layers 1 & 2 (2 matmuls each)
             + 2 * B * H * O)                  # fc head
    bytes_accessed = 4 * (x_tm.size + wih0.size + b0.size + whh0.size
                          + w12.size + b12.size + fcw.size + fcb.size + B * O)
    cost = pl.CostEstimate(flops=flops,
                           transcendentals=3 * T * B * H,
                           bytes_accessed=bytes_accessed)

    # Explicit scoped-VMEM sizing with headroom (v5e default is only 16 MiB;
    # v7x physical VMEM is 64 MiB).
    buf_bytes = 4 * (T * TB * I + wih0.size + b0.size + whh0.size + w12.size
                     + b12.size + fcw.size + fcb.size + TB * O + T * TB * H)
    vmem_limit = int(min(64 * 2**20, max(4 * buf_bytes, 16 * 2**20)))

    return pl.pallas_call(
        _rnn_kernel,
        out_shape=jax.ShapeDtypeStruct((B, O), jnp.float32),
        grid=grid,
        in_specs=in_specs,
        out_specs=out_spec,
        scratch_shapes=[pltpu.VMEM((T, TB, H), jnp.float32)],
        compiler_params=pltpu.CompilerParams(
            dimension_semantics=("parallel",),
            vmem_limit_bytes=vmem_limit),
        cost_estimate=cost,
    )(x_tm, wih0, b0, whh0, w12, b12, fcw, fcb)


def rnn_reference(x, params):
    """Pure-JAX reference matching torch.nn.RNN(batch_first=True) semantics."""
    B, T, I = x.shape
    H = params["w_hh0"].shape[0]
    h = [jnp.zeros((B, H), jnp.float32) for _ in range(3)]
    ws = [(params["w_ih0"], params["w_hh0"], params["b_ih0"], params["b_hh0"]),
          (params["w_ih1"], params["w_hh1"], params["b_ih1"], params["b_hh1"]),
          (params["w_ih2"], params["w_hh2"], params["b_ih2"], params["b_hh2"])]
    for t in range(T):
        inp = x[:, t, :]
        for l, (wih, whh, bih, bhh) in enumerate(ws):
            h[l] = jnp.tanh(inp @ wih.T + bih + h[l] @ whh.T + bhh)
            inp = h[l]
    return h[2] @ params["fc_w"].T + params["fc_b"]


def init_params(key, input_size=1, hidden_size=32, output_size=1):
    H, I, O = hidden_size, input_size, output_size
    ks = jax.random.split(key, 14)
    s = 1.0 / jnp.sqrt(H)

    def u(k, shape):
        return jax.random.uniform(k, shape, jnp.float32, -s, s)

    return {
        "w_ih0": u(ks[0], (H, I)), "w_hh0": u(ks[1], (H, H)),
        "b_ih0": u(ks[2], (H,)),   "b_hh0": u(ks[3], (H,)),
        "w_ih1": u(ks[4], (H, H)), "w_hh1": u(ks[5], (H, H)),
        "b_ih1": u(ks[6], (H,)),   "b_hh1": u(ks[7], (H,)),
        "w_ih2": u(ks[8], (H, H)), "w_hh2": u(ks[9], (H, H)),
        "b_ih2": u(ks[10], (H,)),  "b_hh2": u(ks[11], (H,)),
        "fc_w": u(ks[12], (O, H)), "fc_b": u(ks[13], (O,)),
    }


if __name__ == "__main__":
    key = jax.random.PRNGKey(0)
    k_x, k_p = jax.random.split(key)

    B, T, I, H, O = 2, 8, 1, 32, 1
    x = jax.random.normal(k_x, (B, T, I), jnp.float32)
    params = init_params(k_p, input_size=I, hidden_size=H, output_size=O)

    out = rnn_forward(x, params)
    out = jax.block_until_ready(out)

    ref = rnn_reference(x, params)
    assert out.shape == (B, O)
    assert jnp.allclose(out, ref, atol=1e-5, rtol=1e-5), (out, ref)
    print("KERNEL_OK")
</pallas_src>

<mosaic_0001>
module attributes {stable_mosaic.version = 11 : i64} {
  func.func @_rnn_kernel(%arg0: i32, %arg1: memref<8x2x1xf32, #tpu.memory_space<vmem>>, %arg2: memref<1x32xf32, #tpu.memory_space<vmem>>, %arg3: memref<1x32xf32, #tpu.memory_space<vmem>>, %arg4: memref<32x32xf32, #tpu.memory_space<vmem>>, %arg5: memref<4x32x32xf32, #tpu.memory_space<vmem>>, %arg6: memref<2x1x32xf32, #tpu.memory_space<vmem>>, %arg7: memref<1x32xf32, #tpu.memory_space<vmem>>, %arg8: memref<1x1xf32, #tpu.memory_space<vmem>>, %arg9: memref<2x1xf32, #tpu.memory_space<vmem>>, %arg10: memref<8x2x32xf32, #tpu.memory_space<vmem>>) attributes {dimension_semantics = [#tpu.dimension_semantics<parallel>], iteration_bounds = array<i64: 1>, scalar_prefetch = 0 : i64, scratch_operands = 1 : i64, tpu.core_type = #tpu.core_type<tc>, window_params = [{transform_indices = @transform_0, window_bounds = array<i64: 8, 2, 1>}, {pipeline_mode = #tpu.pipeline_mode<synchronous>, transform_indices = @transform_1, window_bounds = array<i64: 1, 32>}, {pipeline_mode = #tpu.pipeline_mode<synchronous>, transform_indices = @transform_2, window_bounds = array<i64: 1, 32>}, {pipeline_mode = #tpu.pipeline_mode<synchronous>, transform_indices = @transform_3, window_bounds = array<i64: 32, 32>}, {pipeline_mode = #tpu.pipeline_mode<synchronous>, transform_indices = @transform_4, window_bounds = array<i64: 4, 32, 32>}, {pipeline_mode = #tpu.pipeline_mode<synchronous>, transform_indices = @transform_5, window_bounds = array<i64: 2, 1, 32>}, {pipeline_mode = #tpu.pipeline_mode<synchronous>, transform_indices = @transform_6, window_bounds = array<i64: 1, 32>}, {pipeline_mode = #tpu.pipeline_mode<synchronous>, transform_indices = @transform_7, window_bounds = array<i64: 1, 1>}, {transform_indices = @transform_8, window_bounds = array<i64: 2, 1>}]} {
    %c0 = arith.constant 0 : index
    %c0_0 = arith.constant 0 : index
    %c0_1 = arith.constant 0 : index
    %0 = vector.load %arg1[%c0, %c0_0, %c0_1] : memref<8x2x1xf32, #tpu.memory_space<vmem>>, vector<8x2x1xf32>
    %c0_2 = arith.constant 0 : index
    %c0_3 = arith.constant 0 : index
    %1 = vector.load %arg2[%c0_2, %c0_3] : memref<1x32xf32, #tpu.memory_space<vmem>>, vector<1x32xf32>
    %c0_4 = arith.constant 0 : index
    %c0_5 = arith.constant 0 : index
    %2 = vector.load %arg3[%c0_4, %c0_5] : memref<1x32xf32, #tpu.memory_space<vmem>>, vector<1x32xf32>
    %3 = vector.shape_cast %1 : vector<1x32xf32> to vector<1x1x32xf32>
    %4 = vector.broadcast %0 : vector<8x2x1xf32> to vector<8x2x32xf32>
    %5 = vector.broadcast %3 : vector<1x1x32xf32> to vector<8x2x32xf32>
    %6 = arith.mulf %4, %5 : vector<8x2x32xf32>
    %7 = vector.shape_cast %2 : vector<1x32xf32> to vector<1x1x32xf32>
    %8 = vector.broadcast %7 : vector<1x1x32xf32> to vector<8x2x32xf32>
    %9 = arith.addf %6, %8 : vector<8x2x32xf32>
    %c0_6 = arith.constant 0 : index
    %c0_7 = arith.constant 0 : index
    %c0_8 = arith.constant 0 : index
    %10 = vector.load %arg10[%c0_6, %c0_7, %c0_8] : memref<8x2x32xf32, #tpu.memory_space<vmem>>, vector<8x2x32xf32>
    tpu.vector_store %arg10[%c0_6, %c0_7, %c0_8], %9 {strides = array<i32>} : memref<8x2x32xf32, #tpu.memory_space<vmem>>, vector<8x2x32xf32>,
    %c0_9 = arith.constant 0 : index
    %c0_10 = arith.constant 0 : index
    %11 = vector.load %arg4[%c0_9, %c0_10] : memref<32x32xf32, #tpu.memory_space<vmem>>, vector<32x32xf32>
    %c0_11 = arith.constant 0 : index
    %c0_12 = arith.constant 0 : index
    %c0_13 = arith.constant 0 : index
    %12 = vector.load %arg5[%c0_11, %c0_12, %c0_13] : memref<4x32x32xf32, #tpu.memory_space<vmem>>, vector<1x32x32xf32>
    %13 = vector.shape_cast %12 : vector<1x32x32xf32> to vector<32x32xf32>
    %c1 = arith.constant 1 : index
    %c0_14 = arith.constant 0 : index
    %c0_15 = arith.constant 0 : index
    %14 = vector.load %arg5[%c1, %c0_14, %c0_15] : memref<4x32x32xf32, #tpu.memory_space<vmem>>, vector<1x32x32xf32>
    %15 = vector.shape_cast %14 : vector<1x32x32xf32> to vector<32x32xf32>
    %c2 = arith.constant 2 : index
    %c0_16 = arith.constant 0 : index
    %c0_17 = arith.constant 0 : index
    %16 = vector.load %arg5[%c2, %c0_16, %c0_17] : memref<4x32x32xf32, #tpu.memory_space<vmem>>, vector<1x32x32xf32>
    %17 = vector.shape_cast %16 : vector<1x32x32xf32> to vector<32x32xf32>
    %c3 = arith.constant 3 : index
    %c0_18 = arith.constant 0 : index
    %c0_19 = arith.constant 0 : index
    %18 = vector.load %arg5[%c3, %c0_18, %c0_19] : memref<4x32x32xf32, #tpu.memory_space<vmem>>, vector<1x32x32xf32>
    %19 = vector.shape_cast %18 : vector<1x32x32xf32> to vector<32x32xf32>
    %c0_20 = arith.constant 0 : index
    %c0_21 = arith.constant 0 : index
    %c0_22 = arith.constant 0 : index
    %20 = vector.load %arg6[%c0_20, %c0_21, %c0_22] : memref<2x1x32xf32, #tpu.memory_space<vmem>>, vector<1x1x32xf32>
    %21 = vector.shape_cast %20 : vector<1x1x32xf32> to vector<1x32xf32>
    %22 = vector.shape_cast %21 : vector<1x32xf32> to vector<1x32xf32>
    %23 = vector.broadcast %22 : vector<1x32xf32> to vector<2x32xf32>
    %c1_23 = arith.constant 1 : index
    %c0_24 = arith.constant 0 : index
    %c0_25 = arith.constant 0 : index
    %24 = vector.load %arg6[%c1_23, %c0_24, %c0_25] : memref<2x1x32xf32, #tpu.memory_space<vmem>>, vector<1x1x32xf32>
    %25 = vector.shape_cast %24 : vector<1x1x32xf32> to vector<1x32xf32>
    %26 = vector.shape_cast %25 : vector<1x32xf32> to vector<1x32xf32>
    %27 = vector.broadcast %26 : vector<1x32xf32> to vector<2x32xf32>
    %c0_26 = arith.constant 0 : index
    %c0_27 = arith.constant 0 : index
    %c0_28 = arith.constant 0 : index
    %28 = vector.load %arg10[%c0_26, %c0_27, %c0_28] : memref<8x2x32xf32, #tpu.memory_space<vmem>>, vector<1x2x32xf32>
    %29 = vector.shape_cast %28 : vector<1x2x32xf32> to vector<2x32xf32>
    %30 = math.tanh %29 : vector<2x32xf32>
    %cst = arith.constant dense<0.000000e+00> : vector<2x32xf32>
    %31 = tpu.matmul %30, %13, %cst {dimension_numbers = #tpu.dot_dimension_numbers<[1], [0], [0], [1], [0, 0, 1, 1], [], []>} : vector<2x32xf32>, vector<32x32xf32>, vector<2x32xf32> -> vector<2x32xf32>
    %32 = arith.addf %31, %23 : vector<2x32xf32>
    %33 = math.tanh %32 : vector<2x32xf32>
    %cst_29 = arith.constant dense<0.000000e+00> : vector<2x32xf32>
    %34 = tpu.matmul %33, %17, %cst_29 {dimension_numbers = #tpu.dot_dimension_numbers<[1], [0], [0], [1], [0, 0, 1, 1], [], []>} : vector<2x32xf32>, vector<32x32xf32>, vector<2x32xf32> -> vector<2x32xf32>
    %35 = arith.addf %34, %27 : vector<2x32xf32>
    %36 = math.tanh %35 : vector<2x32xf32>
    %cst_30 = arith.constant dense<0.000000e+00> : vector<2x32xf32>
    %37 = tpu.matmul %30, %11, %cst_30 {dimension_numbers = #tpu.dot_dimension_numbers<[1], [0], [0], [1], [0, 0, 1, 1], [], []>} : vector<2x32xf32>, vector<32x32xf32>, vector<2x32xf32> -> vector<2x32xf32>
    %cst_31 = arith.constant dense<0.000000e+00> : vector<2x32xf32>
    %38 = tpu.matmul %33, %15, %cst_31 {dimension_numbers = #tpu.dot_dimension_numbers<[1], [0], [0], [1], [0, 0, 1, 1], [], []>} : vector<2x32xf32>, vector<32x32xf32>, vector<2x32xf32> -> vector<2x32xf32>
    %cst_32 = arith.constant dense<0.000000e+00> : vector<2x32xf32>
    %39 = tpu.matmul %36, %19, %cst_32 {dimension_numbers = #tpu.dot_dimension_numbers<[1], [0], [0], [1], [0, 0, 1, 1], [], []>} : vector<2x32xf32>, vector<32x32xf32>, vector<2x32xf32> -> vector<2x32xf32>
    %c1_33 = arith.constant 1 : index
    %c0_34 = arith.constant 0 : index
    %c0_35 = arith.constant 0 : index
    %40 = vector.load %arg10[%c1_33, %c0_34, %c0_35] : memref<8x2x32xf32, #tpu.memory_space<vmem>>, vector<1x2x32xf32>
    %41 = vector.shape_cast %40 : vector<1x2x32xf32> to vector<2x32xf32>
    %42 = arith.addf %41, %37 : vector<2x32xf32>
    %43 = math.tanh %42 : vector<2x32xf32>
    %cst_36 = arith.constant dense<0.000000e+00> : vector<2x32xf32>
    %44 = tpu.matmul %43, %13, %cst_36 {dimension_numbers = #tpu.dot_dimension_numbers<[1], [0], [0], [1], [0, 0, 1, 1], [], []>} : vector<2x32xf32>, vector<32x32xf32>, vector<2x32xf32> -> vector<2x32xf32>
    %45 = arith.addf %44, %38 : vector<2x32xf32>
    %46 = arith.addf %45, %23 : vector<2x32xf32>
    %47 = math.tanh %46 : vector<2x32xf32>
    %cst_37 = arith.constant dense<0.000000e+00> : vector<2x32xf32>
    %48 = tpu.matmul %47, %17, %cst_37 {dimension_numbers = #tpu.dot_dimension_numbers<[1], [0], [0], [1], [0, 0, 1, 1], [], []>} : vector<2x32xf32>, vector<32x32xf32>, vector<2x32xf32> -> vector<2x32xf32>
    %49 = arith.addf %48, %39 : vector<2x32xf32>
    %50 = arith.addf %49, %27 : vector<2x32xf32>
    %51 = math.tanh %50 : vector<2x32xf32>
    %cst_38 = arith.constant dense<0.000000e+00> : vector<2x32xf32>
    %52 = tpu.matmul %43, %11, %cst_38 {dimension_numbers = #tpu.dot_dimension_numbers<[1], [0], [0], [1], [0, 0, 1, 1], [], []>} : vector<2x32xf32>, vector<32x32xf32>, vector<2x32xf32> -> vector<2x32xf32>
    %cst_39 = arith.constant dense<0.000000e+00> : vector<2x32xf32>
    %53 = tpu.matmul %47, %15, %cst_39 {dimension_numbers = #tpu.dot_dimension_numbers<[1], [0], [0], [1], [0, 0, 1, 1], [], []>} : vector<2x32xf32>, vector<32x32xf32>, vector<2x32xf32> -> vector<2x32xf32>
    %cst_40 = arith.constant dense<0.000000e+00> : vector<2x32xf32>
    %54 = tpu.matmul %51, %19, %cst_40 {dimension_numbers = #tpu.dot_dimension_numbers<[1], [0], [0], [1], [0, 0, 1, 1], [], []>} : vector<2x32xf32>, vector<32x32xf32>, vector<2x32xf32> -> vector<2x32xf32>
    %c2_41 = arith.constant 2 : index
    %c0_42 = arith.constant 0 : index
    %c0_43 = arith.constant 0 : index
    %55 = vector.load %arg10[%c2_41, %c0_42, %c0_43] : memref<8x2x32xf32, #tpu.memory_space<vmem>>, vector<1x2x32xf32>
    %56 = vector.shape_cast %55 : vector<1x2x32xf32> to vector<2x32xf32>
    %57 = arith.addf %56, %52 : vector<2x32xf32>
    %58 = math.tanh %57 : vector<2x32xf32>
    %cst_44 = arith.constant dense<0.000000e+00> : vector<2x32xf32>
    %59 = tpu.matmul %58, %13, %cst_44 {dimension_numbers = #tpu.dot_dimension_numbers<[1], [0], [0], [1], [0, 0, 1, 1], [], []>} : vector<2x32xf32>, vector<32x32xf32>, vector<2x32xf32> -> vector<2x32xf32>
    %60 = arith.addf %59, %53 : vector<2x32xf32>
    %61 = arith.addf %60, %23 : vector<2x32xf32>
    %62 = math.tanh %61 : vector<2x32xf32>
    %cst_45 = arith.constant dense<0.000000e+00> : vector<2x32xf32>
    %63 = tpu.matmul %62, %17, %cst_45 {dimension_numbers = #tpu.dot_dimension_numbers<[1], [0], [0], [1], [0, 0, 1, 1], [], []>} : vector<2x32xf32>, vector<32x32xf32>, vector<2x32xf32> -> vector<2x32xf32>
    %64 = arith.addf %63, %54 : vector<2x32xf32>
    %65 = arith.addf %64, %27 : vector<2x32xf32>
    %66 = math.tanh %65 : vector<2x32xf32>
    %cst_46 = arith.constant dense<0.000000e+00> : vector<2x32xf32>
    %67 = tpu.matmul %58, %11, %cst_46 {dimension_numbers = #tpu.dot_dimension_numbers<[1], [0], [0], [1], [0, 0, 1, 1], [], []>} : vector<2x32xf32>, vector<32x32xf32>, vector<2x32xf32> -> vector<2x32xf32>
    %cst_47 = arith.constant dense<0.000000e+00> : vector<2x32xf32>
    %68 = tpu.matmul %62, %15, %cst_47 {dimension_numbers = #tpu.dot_dimension_numbers<[1], [0], [0], [1], [0, 0, 1, 1], [], []>} : vector<2x32xf32>, vector<32x32xf32>, vector<2x32xf32> -> vector<2x32xf32>
    %cst_48 = arith.constant dense<0.000000e+00> : vector<2x32xf32>
    %69 = tpu.matmul %66, %19, %cst_48 {dimension_numbers = #tpu.dot_dimension_numbers<[1], [0], [0], [1], [0, 0, 1, 1], [], []>} : vector<2x32xf32>, vector<32x32xf32>, vector<2x32xf32> -> vector<2x32xf32>
    %c3_49 = arith.constant 3 : index
    %c0_50 = arith.constant 0 : index
    %c0_51 = arith.constant 0 : index
    %70 = vector.load %arg10[%c3_49, %c0_50, %c0_51] : memref<8x2x32xf32, #tpu.memory_space<vmem>>, vector<1x2x32xf32>
    %71 = vector.shape_cast %70 : vector<1x2x32xf32> to vector<2x32xf32>
    %72 = arith.addf %71, %67 : vector<2x32xf32>
    %73 = math.tanh %72 : vector<2x32xf32>
    %cst_52 = arith.constant dense<0.000000e+00> : vector<2x32xf32>
    %74 = tpu.matmul %73, %13, %cst_52 {dimension_numbers = #tpu.dot_dimension_numbers<[1], [0], [0], [1], [0, 0, 1, 1], [], []>} : vector<2x32xf32>, vector<32x32xf32>, vector<2x32xf32> -> vector<2x32xf32>
    %75 = arith.addf %74, %68 : vector<2x32xf32>
    %76 = arith.addf %75, %23 : vector<2x32xf32>
    %77 = math.tanh %76 : vector<2x32xf32>
    %cst_53 = arith.constant dense<0.000000e+00> : vector<2x32xf32>
    %78 = tpu.matmul %77, %17, %cst_53 {dimension_numbers = #tpu.dot_dimension_numbers<[1], [0], [0], [1], [0, 0, 1, 1], [], []>} : vector<2x32xf32>, vector<32x32xf32>, vector<2x32xf32> -> vector<2x32xf32>
    %79 = arith.addf %78, %69 : vector<2x32xf32>
    %80 = arith.addf %79, %27 : vector<2x32xf32>
    %81 = math.tanh %80 : vector<2x32xf32>
    %cst_54 = arith.constant dense<0.000000e+00> : vector<2x32xf32>
    %82 = tpu.matmul %73, %11, %cst_54 {dimension_numbers = #tpu.dot_dimension_numbers<[1], [0], [0], [1], [0, 0, 1, 1], [], []>} : vector<2x32xf32>, vector<32x32xf32>, vector<2x32xf32> -> vector<2x32xf32>
    %cst_55 = arith.constant dense<0.000000e+00> : vector<2x32xf32>
    %83 = tpu.matmul %77, %15, %cst_55 {dimension_numbers = #tpu.dot_dimension_numbers<[1], [0], [0], [1], [0, 0, 1, 1], [], []>} : vector<2x32xf32>, vector<32x32xf32>, vector<2x32xf32> -> vector<2x32xf32>
    %cst_56 = arith.constant dense<0.000000e+00> : vector<2x32xf32>
    %84 = tpu.matmul %81, %19, %cst_56 {dimension_numbers = #tpu.dot_dimension_numbers<[1], [0], [0], [1], [0, 0, 1, 1], [], []>} : vector<2x32xf32>, vector<32x32xf32>, vector<2x32xf32> -> vector<2x32xf32>
    %c4 = arith.constant 4 : index
    %c0_57 = arith.constant 0 : index
    %c0_58 = arith.constant 0 : index
    %85 = vector.load %arg10[%c4, %c0_57, %c0_58] : memref<8x2x32xf32, #tpu.memory_space<vmem>>, vector<1x2x32xf32>
    %86 = vector.shape_cast %85 : vector<1x2x32xf32> to vector<2x32xf32>
    %87 = arith.addf %86, %82 : vector<2x32xf32>
    %88 = math.tanh %87 : vector<2x32xf32>
    %cst_59 = arith.constant dense<0.000000e+00> : vector<2x32xf32>
    %89 = tpu.matmul %88, %13, %cst_59 {dimension_numbers = #tpu.dot_dimension_numbers<[1], [0], [0], [1], [0, 0, 1, 1], [], []>} : vector<2x32xf32>, vector<32x32xf32>, vector<2x32xf32> -> vector<2x32xf32>
    %90 = arith.addf %89, %83 : vector<2x32xf32>
    %91 = arith.addf %90, %23 : vector<2x32xf32>
    %92 = math.tanh %91 : vector<2x32xf32>
    %cst_60 = arith.constant dense<0.000000e+00> : vector<2x32xf32>
    %93 = tpu.matmul %92, %17, %cst_60 {dimension_numbers = #tpu.dot_dimension_numbers<[1], [0], [0], [1], [0, 0, 1, 1], [], []>} : vector<2x32xf32>, vector<32x32xf32>, vector<2x32xf32> -> vector<2x32xf32>
    %94 = arith.addf %93, %84 : vector<2x32xf32>
    %95 = arith.addf %94, %27 : vector<2x32xf32>
    %96 = math.tanh %95 : vector<2x32xf32>
    %cst_61 = arith.constant dense<0.000000e+00> : vector<2x32xf32>
    %97 = tpu.matmul %88, %11, %cst_61 {dimension_numbers = #tpu.dot_dimension_numbers<[1], [0], [0], [1], [0, 0, 1, 1], [], []>} : vector<2x32xf32>, vector<32x32xf32>, vector<2x32xf32> -> vector<2x32xf32>
    %cst_62 = arith.constant dense<0.000000e+00> : vector<2x32xf32>
    %98 = tpu.matmul %92, %15, %cst_62 {dimension_numbers = #tpu.dot_dimension_numbers<[1], [0], [0], [1], [0, 0, 1, 1], [], []>} : vector<2x32xf32>, vector<32x32xf32>, vector<2x32xf32> -> vector<2x32xf32>
    %cst_63 = arith.constant dense<0.000000e+00> : vector<2x32xf32>
    %99 = tpu.matmul %96, %19, %cst_63 {dimension_numbers = #tpu.dot_dimension_numbers<[1], [0], [0], [1], [0, 0, 1, 1], [], []>} : vector<2x32xf32>, vector<32x32xf32>, vector<2x32xf32> -> vector<2x32xf32>
    %c5 = arith.constant 5 : index
    %c0_64 = arith.constant 0 : index
    %c0_65 = arith.constant 0 : index
    %100 = vector.load %arg10[%c5, %c0_64, %c0_65] : memref<8x2x32xf32, #tpu.memory_space<vmem>>, vector<1x2x32xf32>
    %101 = vector.shape_cast %100 : vector<1x2x32xf32> to vector<2x32xf32>
    %102 = arith.addf %101, %97 : vector<2x32xf32>
    %103 = math.tanh %102 : vector<2x32xf32>
    %cst_66 = arith.constant dense<0.000000e+00> : vector<2x32xf32>
    %104 = tpu.matmul %103, %13, %cst_66 {dimension_numbers = #tpu.dot_dimension_numbers<[1], [0], [0], [1], [0, 0, 1, 1], [], []>} : vector<2x32xf32>, vector<32x32xf32>, vector<2x32xf32> -> vector<2x32xf32>
    %105 = arith.addf %104, %98 : vector<2x32xf32>
    %106 = arith.addf %105, %23 : vector<2x32xf32>
    %107 = math.tanh %106 : vector<2x32xf32>
    %cst_67 = arith.constant dense<0.000000e+00> : vector<2x32xf32>
    %108 = tpu.matmul %107, %17, %cst_67 {dimension_numbers = #tpu.dot_dimension_numbers<[1], [0], [0], [1], [0, 0, 1, 1], [], []>} : vector<2x32xf32>, vector<32x32xf32>, vector<2x32xf32> -> vector<2x32xf32>
    %109 = arith.addf %108, %99 : vector<2x32xf32>
    %110 = arith.addf %109, %27 : vector<2x32xf32>
    %111 = math.tanh %110 : vector<2x32xf32>
    %cst_68 = arith.constant dense<0.000000e+00> : vector<2x32xf32>
    %112 = tpu.matmul %103, %11, %cst_68 {dimension_numbers = #tpu.dot_dimension_numbers<[1], [0], [0], [1], [0, 0, 1, 1], [], []>} : vector<2x32xf32>, vector<32x32xf32>, vector<2x32xf32> -> vector<2x32xf32>
    %cst_69 = arith.constant dense<0.000000e+00> : vector<2x32xf32>
    %113 = tpu.matmul %107, %15, %cst_69 {dimension_numbers = #tpu.dot_dimension_numbers<[1], [0], [0], [1], [0, 0, 1, 1], [], []>} : vector<2x32xf32>, vector<32x32xf32>, vector<2x32xf32> -> vector<2x32xf32>
    %cst_70 = arith.constant dense<0.000000e+00> : vector<2x32xf32>
    %114 = tpu.matmul %111, %19, %cst_70 {dimension_numbers = #tpu.dot_dimension_numbers<[1], [0], [0], [1], [0, 0, 1, 1], [], []>} : vector<2x32xf32>, vector<32x32xf32>, vector<2x32xf32> -> vector<2x32xf32>
    %c6 = arith.constant 6 : index
    %c0_71 = arith.constant 0 : index
    %c0_72 = arith.constant 0 : index
    %115 = vector.load %arg10[%c6, %c0_71, %c0_72] : memref<8x2x32xf32, #tpu.memory_space<vmem>>, vector<1x2x32xf32>
    %116 = vector.shape_cast %115 : vector<1x2x32xf32> to vector<2x32xf32>
    %117 = arith.addf %116, %112 : vector<2x32xf32>
    %118 = math.tanh %117 : vector<2x32xf32>
    %cst_73 = arith.constant dense<0.000000e+00> : vector<2x32xf32>
    %119 = tpu.matmul %118, %13, %cst_73 {dimension_numbers = #tpu.dot_dimension_numbers<[1], [0], [0], [1], [0, 0, 1, 1], [], []>} : vector<2x32xf32>, vector<32x32xf32>, vector<2x32xf32> -> vector<2x32xf32>
    %120 = arith.addf %119, %113 : vector<2x32xf32>
    %121 = arith.addf %120, %23 : vector<2x32xf32>
    %122 = math.tanh %121 : vector<2x32xf32>
    %cst_74 = arith.constant dense<0.000000e+00> : vector<2x32xf32>
    %123 = tpu.matmul %122, %17, %cst_74 {dimension_numbers = #tpu.dot_dimension_numbers<[1], [0], [0], [1], [0, 0, 1, 1], [], []>} : vector<2x32xf32>, vector<32x32xf32>, vector<2x32xf32> -> vector<2x32xf32>
    %124 = arith.addf %123, %114 : vector<2x32xf32>
    %125 = arith.addf %124, %27 : vector<2x32xf32>
    %126 = math.tanh %125 : vector<2x32xf32>
    %cst_75 = arith.constant dense<0.000000e+00> : vector<2x32xf32>
    %127 = tpu.matmul %118, %11, %cst_75 {dimension_numbers = #tpu.dot_dimension_numbers<[1], [0], [0], [1], [0, 0, 1, 1], [], []>} : vector<2x32xf32>, vector<32x32xf32>, vector<2x32xf32> -> vector<2x32xf32>
    %cst_76 = arith.constant dense<0.000000e+00> : vector<2x32xf32>
    %128 = tpu.matmul %122, %15, %cst_76 {dimension_numbers = #tpu.dot_dimension_numbers<[1], [0], [0], [1], [0, 0, 1, 1], [], []>} : vector<2x32xf32>, vector<32x32xf32>, vector<2x32xf32> -> vector<2x32xf32>
    %cst_77 = arith.constant dense<0.000000e+00> : vector<2x32xf32>
    %129 = tpu.matmul %126, %19, %cst_77 {dimension_numbers = #tpu.dot_dimension_numbers<[1], [0], [0], [1], [0, 0, 1, 1], [], []>} : vector<2x32xf32>, vector<32x32xf32>, vector<2x32xf32> -> vector<2x32xf32>
    %c7 = arith.constant 7 : index
    %c0_78 = arith.constant 0 : index
    %c0_79 = arith.constant 0 : index
    %130 = vector.load %arg10[%c7, %c0_78, %c0_79] : memref<8x2x32xf32, #tpu.memory_space<vmem>>, vector<1x2x32xf32>
    %131 = vector.shape_cast %130 : vector<1x2x32xf32> to vector<2x32xf32>
    %132 = arith.addf %131, %127 : vector<2x32xf32>
    %133 = math.tanh %132 : vector<2x32xf32>
    %cst_80 = arith.constant dense<0.000000e+00> : vector<2x32xf32>
    %134 = tpu.matmul %133, %13, %cst_80 {dimension_numbers = #tpu.dot_dimension_numbers<[1], [0], [0], [1], [0, 0, 1, 1], [], []>} : vector<2x32xf32>, vector<32x32xf32>, vector<2x32xf32> -> vector<2x32xf32>
    %135 = arith.addf %134, %128 : vector<2x32xf32>
    %136 = arith.addf %135, %23 : vector<2x32xf32>
    %137 = math.tanh %136 : vector<2x32xf32>
    %cst_81 = arith.constant dense<0.000000e+00> : vector<2x32xf32>
    %138 = tpu.matmul %137, %17, %cst_81 {dimension_numbers = #tpu.dot_dimension_numbers<[1], [0], [0], [1], [0, 0, 1, 1], [], []>} : vector<2x32xf32>, vector<32x32xf32>, vector<2x32xf32> -> vector<2x32xf32>
    %139 = arith.addf %138, %129 : vector<2x32xf32>
    %140 = arith.addf %139, %27 : vector<2x32xf32>
    %141 = math.tanh %140 : vector<2x32xf32>
    %c0_82 = arith.constant 0 : index
    %c0_83 = arith.constant 0 : index
    %142 = vector.load %arg7[%c0_82, %c0_83] : memref<1x32xf32, #tpu.memory_space<vmem>>, vector<1x32xf32>
    %143 = vector.broadcast %142 : vector<1x32xf32> to vector<2x32xf32>
    %144 = arith.mulf %141, %143 : vector<2x32xf32>
    %cst_84 = arith.constant dense<0.000000e+00> : vector<2xf32>
    %145 = vector.multi_reduction <add>, %144, %cst_84 [1] : vector<2x32xf32> to vector<2xf32>
    %146 = vector.shape_cast %145 : vector<2xf32> to vector<2x1xf32>
    %c0_85 = arith.constant 0 : index
    %c0_86 = arith.constant 0 : index
    %147 = vector.load %arg8[%c0_85, %c0_86] : memref<1x1xf32, #tpu.memory_space<vmem>>, vector<1x1xf32>
    %148 = vector.broadcast %147 : vector<1x1xf32> to vector<2x1xf32>
    %149 = arith.addf %146, %148 : vector<2x1xf32>
    %c0_87 = arith.constant 0 : index
    %c0_88 = arith.constant 0 : index
    %150 = vector.load %arg9[%c0_87, %c0_88] : memref<2x1xf32, #tpu.memory_space<vmem>>, vector<2x1xf32>
    tpu.vector_store %arg9[%c0_87, %c0_88], %149 {strides = array<i32>} : memref<2x1xf32, #tpu.memory_space<vmem>>, vector<2x1xf32>,
    return
  }
  func.func @transform_0(%arg0: i32) -> (i32, i32, i32) {
    %c0_i32 = arith.constant 0 : i32
    %c0_i32_0 = arith.constant 0 : i32
    %c0_i32_1 = arith.constant 0 : i32
    return %c0_i32, %arg0, %c0_i32_0 : i32, i32, i32
  }
  func.func @transform_1(%arg0: i32) -> (i32, i32) {
    %c0_i32 = arith.constant 0 : i32
    %c0_i32_0 = arith.constant 0 : i32
    %c0_i32_1 = arith.constant 0 : i32
    return %c0_i32, %c0_i32_0 : i32, i32
  }
  func.func @transform_2(%arg0: i32) -> (i32, i32) {
    %c0_i32 = arith.constant 0 : i32
    %c0_i32_0 = arith.constant 0 : i32
    %c0_i32_1 = arith.constant 0 : i32
    return %c0_i32, %c0_i32_0 : i32, i32
  }
  func.func @transform_3(%arg0: i32) -> (i32, i32) {
    %c0_i32 = arith.constant 0 : i32
    %c0_i32_0 = arith.constant 0 : i32
    %c0_i32_1 = arith.constant 0 : i32
    return %c0_i32, %c0_i32_0 : i32, i32
  }
  func.func @transform_4(%arg0: i32) -> (i32, i32, i32) {
    %c0_i32 = arith.constant 0 : i32
    %c0_i32_0 = arith.constant 0 : i32
    %c0_i32_1 = arith.constant 0 : i32
    %c0_i32_2 = arith.constant 0 : i32
    return %c0_i32, %c0_i32_0, %c0_i32_1 : i32, i32, i32
  }
  func.func @transform_5(%arg0: i32) -> (i32, i32, i32) {
    %c0_i32 = arith.constant 0 : i32
    %c0_i32_0 = arith.constant 0 : i32
    %c0_i32_1 = arith.constant 0 : i32
    %c0_i32_2 = arith.constant 0 : i32
    return %c0_i32, %c0_i32_0, %c0_i32_1 : i32, i32, i32
  }
  func.func @transform_6(%arg0: i32) -> (i32, i32) {
    %c0_i32 = arith.constant 0 : i32
    %c0_i32_0 = arith.constant 0 : i32
    %c0_i32_1 = arith.constant 0 : i32
    return %c0_i32, %c0_i32_0 : i32, i32
  }
  func.func @transform_7(%arg0: i32) -> (i32, i32) {
    %c0_i32 = arith.constant 0 : i32
    %c0_i32_0 = arith.constant 0 : i32
    %c0_i32_1 = arith.constant 0 : i32
    return %c0_i32, %c0_i32_0 : i32, i32
  }
  func.func @transform_8(%arg0: i32) -> (i32, i32) {
    %c0_i32 = arith.constant 0 : i32
    %c0_i32_0 = arith.constant 0 : i32
    return %arg0, %c0_i32 : i32, i32
  }
}

</mosaic_0001>

<bundles_post_ra>
// kernel: tpu_custom_call.1
= control target key start
LH: loop header
LB: loop body
LE: loop exit
PB: predicated region body
PF: predicated region fallthrough
CT: control target
= control target key end

     0   :  { %s4359_s0 = inlined_call_operand.vmem [shape: f32[8,2,1], index: 0, kind: input, shape index: {}]   ;;  %s4360_s1 = inlined_call_operand.vmem [shape: f32[1,32], index: 1, kind: input, shape index: {}]   ;;  %s4361_s2 = inlined_call_operand.hbm [shape: f32[1,32], index: 2, kind: input, shape index: {}]   ;;  %s4362_s3 = inlined_call_operand.vmem [shape: f32[32,32], index: 3, kind: input, shape index: {}]   ;;  %s4363_s4 = inlined_call_operand.hbm [shape: f32[4,32,32], index: 4, kind: input, shape index: {}]   ;;  %s4364_s5 = inlined_call_operand.vmem [shape: f32[2,1,32], index: 5, kind: input, shape index: {}]   ;;  %s4365_s6 = inlined_call_operand.vmem [shape: f32[1,32], index: 6, kind: input, shape index: {}]   ;;  %s4366_s7 = inlined_call_operand.<no memory space> [shape: f32[1,1], index: 7, kind: input, shape index: {}]   ;;  %s4367_s8 = inlined_call_operand.vmem [shape: f32[2,1], index: 8, kind: output, shape index: {}]  }
   0x1   :  { %v13_v0 = vstv %s4366_s7 }
   0x2   :  { %14 = vst [vmem:[#allocation3] sm:$0x1] %v13_v0 }
   0x3   :  { %15 = vsyncpa [#allocation5], 0 }
   0x4   :  { %16 = vsyncpa [#allocation7], 0  ;;  %s3893_s29 = smov [#allocation4]   ;;  %s3894_s9 = smov [#allocation6]  }
   0x5   :  { %s27_s30 = sshll.u32 %s3893_s29, 4  ;;  %s38_s10 = sshll.u32 %s3894_s9, 4  ;;  %s28_s30 = int_to_ptr.vmem [resolvable:$true] %s27_s30  ;;  %s3949_s10 = int_to_ptr.vmem [resolvable:$true] %s38_s10 }
   0x6   :  { %s3845_s13 = scalar_lea.hbm %s4361_s2, 16 }
   0x7   :  { %p3846_p0 = scmp.ne.s32.totalorder %s4361_s2, %s3845_s13  ;;  %p3849_p1 = scmp.lt.u32.totalorder %s3845_s13, %s4361_s2 }
   0x9   :  { %p3851_p2 = pnand %p3849_p1, %p3846_p0 }
   0xb   :  { %3854 = shalt.err (!%p3851_p2)
}
   0xc   :  { %s3855_s17 = scalar_lea.vmem %s28_s30, 16  ;;  %s3859_s18 = scalar_lea.vmem %s28_s30, 32 }
   0xd   :  { %p3856_p3 = scmp.ne.s32.totalorder %s28_s30, %s3855_s17  ;;  %p3860_p4 = scmp.lt.s32.totalorder %s28_s30, %s28_s30 }
   0xe   :  { %p3861_p5 = scmp.lt.s32.totalorder %s3859_s18, %s3855_s17 }
  0x10   :  { %p3862_p6 = por %p3861_p5, %p3860_p4 }
  0x12   :  { %p3863_p7 = pnand %p3862_p6, %p3856_p3 }
  0x14   :  { %3866 = shalt.err (!%p3863_p7)
}
  0x15   :  { %30 = dma.hbm_to_vmem [thread:$0]  %s4361_s2, 16, %s28_s30, [#allocation5]  }
  0x16   :  { %s3867_s23 = scalar_lea.hbm %s4363_s4, 2048 }
  0x17   :  { %p3868_p8 = scmp.ne.s32.totalorder %s4363_s4, %s3867_s23  ;;  %p3871_p9 = scmp.lt.u32.totalorder %s3867_s23, %s4363_s4 }
  0x19   :  { %p3873_p10 = pnand %p3871_p9, %p3868_p8 }
  0x1b   :  { %3876 = shalt.err (!%p3873_p10)
}
  0x1c   :  { %s3877_s28 = scalar_lea.vmem %s3949_s10, 2048  ;;  %p3882_p12 = scmp.lt.s32.totalorder %s3949_s10, %s3949_s10 }
  0x1d   :  { %p3878_p11 = scmp.ne.s32.totalorder %s3949_s10, %s3877_s28  ;;  %p3883_p13 = scmp.lt.s32.totalorder %s3877_s28, %s3877_s28 }
  0x1f   :  { %p3884_p0 = por %p3883_p13, %p3882_p12 }
  0x21   :  { %p3885_p1 = pnand %p3884_p0, %p3878_p11 }
  0x23   :  { %3888 = shalt.err (!%p3885_p1)
}
  0x24   :  { %s3895_s2 = smov 128   ;;  %s3896_s29 = smov 8  }
  0x25   :  { %44 = dma.hbm_to_vmem [thread:$0]  %s4363_s4, 2048, %s3949_s10, [#allocation7], %s3895_s2, %s3895_s2, %s3896_s29  }
  0x26   :  { %3889 = dma.done.wait [#allocation5], 16  }
  0x27   :  { %3890 = vsyncadd [#allocation5], 4294967280 }
  0x28   :  { %3891 = dma.done.wait [#allocation7], 2048  }
  0x29   :  { %3892 = vsyncadd [#allocation7], 4294965248  ;;  %v3897_v1 = vmov 0   ;;  %v57_v2 = vld [vmem:[%s4359_s0] sm:$0x3]  ;;  %v148_v6 = vld [vmem:[#allocation6] sm:$0xff] }
  0x2a   :  { %3795 = vset.pattern.permute.xlu0 %v3897_v1  ;;  %3796 = vset.pattern.permute.xlu1 %v3897_v1  ;;  %v58_v3 = vld [vmem:[%s4359_s0 + $0x2] sm:$0x3]  ;;  %v61_v4 = vld [vmem:[%s4359_s0 + $0x8] sm:$0x3]  ;;  %v63_v5 = vld [vmem:[%s4359_s0 + $0xc] sm:$0x3] }
  0x2b   :  { %69 = vperm.xlu0 %3795, %v57_v2   ;;  %v149_v7 = vld [vmem:[#allocation6 + $0x8] sm:$0xff]  ;;  %v3898_v9 = vmov 0.0|0.0   ;;  %v150_v10 = vld [vmem:[#allocation6 + $0x10] sm:$0xff]  ;;  %v151_v11 = vld [vmem:[#allocation6 + $0x18] sm:$0xff]  ;;  %vm3899_vm0 = vmmov 0   ;;  %v3900_v13 = vmov 0.0  }
  0x2c   :  { %v3992_v8 = vpack.c.bf16 %v149_v7, %v148_v6  ;;  %3565 = vmatprep.subr.bf16.mxu0 %v3898_v9  ;;  %3571 = vmatprep.subr.bf16.mxu1 %v3898_v9  ;;  %v3998_v12 = vpack.c.bf16 %v151_v11, %v150_v10  ;;  %v4009_v14 = vld [vmem:[%s4360_s1] ss:$0 sm:$0xff]  ;;  %v4011_v15 = vld [vmem:[#allocation4] ss:$0 sm:$0xff]  ;;  %vm135_vm1 = vcmask 254976   ;;  %v145_v30 = vld [vmem:[%s4362_s3 + $0x8] sm:$0xff] }
  0x2d   :  { %3166 = vmatprep.mubr.msk.f32.mxu0 %vm3899_vm0, %v3900_v13  ;;  %3177 = vmatprep.mubr.msk.f32.mxu1 %vm3899_vm0, %v3900_v13  ;;  %v144_v29 = vld [vmem:[%s4362_s3] sm:$0xff]  ;;  %vm184_vm2 = vcmask 261120   ;;  %v146_v32 = vld [vmem:[%s4362_s3 + $0x10] sm:$0xff]  ;;  %v147_v33 = vld [vmem:[%s4362_s3 + $0x18] sm:$0xff]  ;;  %vm2921_vm3 = vcmask 1024  }
  0x2e   :  { %3567 = vmatpush3.bf16.msra.mxu0 %v3992_v8  ;;  %v4031_v31 = vpack.c.bf16 %v145_v30, %v144_v29  ;;  %v4041_v35 = vpack.c.bf16 %v147_v33, %v146_v32  ;;  %v158_v36 = vld [vmem:[#allocation6 + $0x40] sm:$0xff]  ;;  %v159_v37 = vld [vmem:[#allocation6 + $0x48] sm:$0xff]  ;;  %v160_v39 = vld [vmem:[#allocation6 + $0x50] sm:$0xff] }
  0x2f   :  { %74 = vperm.xlu0 %3795, %v58_v3   ;;  %3568 = vmatprep.subr.bf16.mxu0 %v3898_v9  ;;  %v4051_v38 = vpack.c.bf16 %v159_v37, %v158_v36  ;;  %v161_v40 = vld [vmem:[#allocation6 + $0x58] sm:$0xff]  ;;  %v59_v42 = vld [vmem:[%s4359_s0 + $0x4] sm:$0x3]  ;;  %v60_v43 = vld [vmem:[%s4359_s0 + $0x6] sm:$0x3] }
  0x30   :  { %v4055_v41 = vpack.c.bf16 %v161_v40, %v160_v39  ;;  %79 = vperm.xlu1 %3796, %v59_v42   ;;  %v62_v44 = vld [vmem:[%s4359_s0 + $0xa] sm:$0x3]  ;;  %v64_v45 = vld [vmem:[%s4359_s0 + $0xe] sm:$0x3]  ;;  %v4074_v46 = vld [vmem:[%s4364_s5] ss:$0 sm:$0xff] }
  0x31   :  { %3573 = vmatpush3.bf16.msra.mxu1 %v4051_v38  ;;  %v153_v51 = vld [vmem:[#allocation6 + $0x20] sm:$0xff]  ;;  %v154_v52 = vld [vmem:[#allocation6 + $0x28] sm:$0xff]  ;;  %v155_v55 = vld [vmem:[#allocation6 + $0x30] sm:$0xff] }
  0x32   :  { %3570 = vmatpush3.bf16.msra.mxu0 %v3998_v12  ;;  %3574 = vmatprep.subr.bf16.mxu1 %v3898_v9  ;;  %v4077_v54 = vpack.c.bf16 %v154_v52, %v153_v51  ;;  %v156_v56 = vld [vmem:[#allocation6 + $0x38] sm:$0xff]  ;;  %v163_v62 = vld [vmem:[#allocation6 + $0x60] sm:$0xff]  ;;  %v164_v63 = vld [vmem:[#allocation6 + $0x68] sm:$0xff] }
  0x33   :  { %89 = vperm.xlu0 %3795, %v61_v4   ;;  %3577 = vmatprep.subr.bf16.mxu0 %v3898_v9  ;;  %v4081_v60 = vpack.c.bf16 %v156_v56, %v155_v55  ;;  %v4105_v0 = vpack.c.bf16 %v164_v63, %v163_v62  ;;  %v165_v3 = vld [vmem:[#allocation6 + $0x70] sm:$0xff]  ;;  %v166_v4 = vld [vmem:[#allocation6 + $0x78] sm:$0xff] }
  0x34   :  { %84 = vperm.xlu1 %3796, %v60_v43  }
  0x35   :  { %3576 = vmatpush3.bf16.msra.mxu1 %v4055_v41 }
  0x36   :  { %3583 = vmatprep.subr.bf16.mxu1 %v3898_v9 }
  0x37   :  { %99 = vperm.xlu0 %3795, %v63_v5   ;;  %v4112_v5 = vpack.c.bf16 %v166_v4, %v165_v3 }
  0x38   :  { %94 = vperm.xlu1 %3796, %v62_v44  }
  0x3c   :  { %104 = vperm.xlu1 %3796, %v64_v45  }
  0xaa   :  { %v70_v16 = vpop.permute.xlu0 %69 }
  0xab   :  { %v113_v17 = vmul.f32 %v4009_v14, %v70_v16 }
  0xad   :  { %v127_v18 = vadd.f32 %v4011_v15, %v113_v17 }
  0xae   :  { %v75_v19 = vpop.permute.xlu0 %74 }
  0xaf   :  { %136 = vst.msk [vmem:[#allocation2] sm:$0x3] %vm135_vm1, %v127_v18  ;;  %v114_v20 = vmul.f32 %v4009_v14, %v75_v19  ;;  %v80_v1 = vpop.permute.xlu1 %79 }
  0xb0   :  { %v115_v2 = vmul.f32 %v4009_v14, %v80_v1 }
  0xb1   :  { %v128_v21 = vadd.f32 %v4011_v15, %v114_v20 }
  0xb2   :  { %v90_v22 = vpop.permute.xlu0 %89  ;;  %v129_v6 = vadd.f32 %v4011_v15, %v115_v2 }
  0xb3   :  { %137 = vst.msk [vmem:[#allocation2 + $0x2] sm:$0x3] %vm135_vm1, %v128_v21  ;;  %v117_v23 = vmul.f32 %v4009_v14, %v90_v22  ;;  %v85_v7 = vpop.permute.xlu1 %84  ;;  %v4132_v22 = vld [vmem:[%s4364_s5 + $0x1] ss:$0 sm:$0xff] }
  0xb4   :  { %138 = vst.msk [vmem:[#allocation2 + $0x4] sm:$0x3] %vm135_vm1, %v129_v6  ;;  %v116_v10 = vmul.f32 %v4009_v14, %v85_v7 }
  0xb5   :  { %v131_v24 = vadd.f32 %v4011_v15, %v117_v23 }
  0xb6   :  { %v182_v25 = vld [vmem:[#allocation2] sm:$0x3]  ;;  %v100_v26 = vpop.permute.xlu0 %99  ;;  %v130_v11 = vadd.f32 %v4011_v15, %v116_v10 }
  0xb7   :  { %3797 = vtanh.f32 %v182_v25  ;;  %140 = vst.msk [vmem:[#allocation2 + $0x8] sm:$0x3] %vm135_vm1, %v131_v24  ;;  %v119_v27 = vmul.f32 %v4009_v14, %v100_v26  ;;  %v95_v16 = vpop.permute.xlu1 %94 }
  0xb8   :  { %139 = vst.msk [vmem:[#allocation2 + $0x6] sm:$0x3] %vm135_vm1, %v130_v11  ;;  %v118_v17 = vmul.f32 %v4009_v14, %v95_v16 }
  0xb9   :  { %v133_v28 = vadd.f32 %v4011_v15, %v119_v27 }
  0xba   :  { %v547_v58 = vld [vmem:[#allocation2 + $0x2] sm:$0x3]  ;;  %v132_v20 = vadd.f32 %v4011_v15, %v118_v17 }
  0xbb   :  { %142 = vst.msk [vmem:[#allocation2 + $0xc] sm:$0x3] %vm135_vm1, %v133_v28  ;;  %v105_v18 = vpop.permute.xlu1 %104 }
  0xbc   :  { %v120_v19 = vmul.f32 %v4009_v14, %v105_v18  ;;  %141 = vst.msk [vmem:[#allocation2 + $0xa] sm:$0x3] %vm135_vm1, %v132_v20 }
  0xbe   :  { %v134_v21 = vadd.f32 %v4011_v15, %v120_v19 }
  0xc0   :  { %143 = vst.msk [vmem:[#allocation2 + $0xe] sm:$0x3] %vm135_vm1, %v134_v21 }
  0xc1   :  { %v3798_v34 = vpop.eup %3797 }
  0xc2   :  { %3167 = vmatmul.mubr.msk.f32.vlgmr.msra.gmra.mrb[0].mxu0 %vm184_vm2, %v3798_v34 }
  0xc3   :  { %3579 = vmatpush3.bf16.msra.mxu0 %v4031_v31  ;;  %3188 = vmatprep.mubr.msk.f32.mxu0 %vm3899_vm0, %v3900_v13 }
  0xc4   :  { %3580 = vmatprep.subr.bf16.mxu0 %v3898_v9 }
  0xc7   :  { %3582 = vmatpush3.bf16.msra.mxu0 %v4041_v35 }
  0xc8   :  { %3589 = vmatprep.subr.bf16.mxu0 %v3898_v9 }
  0xca   :  { %3189 = vmatmul.mubr.msk.f32.vlgmr.msra.gmra.mrb[2].mxu0 %vm184_vm2, %v3798_v34  ;;  %v914_v34 = vld [vmem:[#allocation2 + $0x4] sm:$0x3] }
  0xcb   :  { %3210 = vmatprep.mubr.msk.f32.mxu0 %vm3899_vm0, %v3900_v13  ;;  %3591 = vmatpush3.bf16.msra.mxu0 %v4105_v0 }
  0xcc   :  { %3592 = vmatprep.subr.bf16.mxu0 %v3898_v9 }
  0xcf   :  { %3594 = vmatpush3.bf16.msra.mxu0 %v4112_v5 }
  0xd0   :  { %3601 = vmatprep.subr.bf16.mxu0 %v3898_v9 }
 0x195   :  { %v254_v47 = vpop.f32.mrb[0].mxu0 }
 0x196   :  { %v255_v48 = vadd.f32 %v4074_v46, %v254_v47  ;;  %v3168_v49 = vpop.f32.mrb[1].mxu0 }
 0x198   :  { %3799 = vtanh.f32 %v255_v48 }
 0x19d   :  { %v399_v50 = vpop.f32.mrb[2].mxu0 }
 0x19e   :  { %v3190_v53 = vpop.f32.mrb[3].mxu0  ;;  %v548_v59 = vadd.f32 %v547_v58, %v399_v50 }
 0x1a0   :  { %3801 = vtanh.f32 %v548_v59  ;;  %v1281_v59 = vld [vmem:[#allocation2 + $0x6] sm:$0x3] }
 0x1a2   :  { %v3800_v57 = vpop.eup %3799 }
 0x1a3   :  { %3178 = vmatmul.mubr.msk.f32.vlgmr.msra.gmra.mrb[0].mxu1 %vm184_vm2, %v3800_v57 }
 0x1a4   :  { %3585 = vmatpush3.bf16.msra.mxu1 %v4077_v54  ;;  %3199 = vmatprep.mubr.msk.f32.mxu1 %vm3899_vm0, %v3900_v13 }
 0x1a5   :  { %3586 = vmatprep.subr.bf16.mxu1 %v3898_v9 }
 0x1a8   :  { %3588 = vmatpush3.bf16.msra.mxu1 %v4081_v60 }
 0x1a9   :  { %3595 = vmatprep.subr.bf16.mxu1 %v3898_v9 }
 0x1aa   :  { %v3802_v61 = vpop.eup %3801 }
 0x1ab   :  { %3200 = vmatmul.mubr.msk.f32.vlgmr.msra.gmra.mrb[2].mxu1 %vm184_vm2, %v3800_v57 }
 0x1ac   :  { %3597 = vmatpush3.bf16.msra.mxu1 %v3992_v8  ;;  %3221 = vmatprep.mubr.msk.f32.mxu1 %vm3899_vm0, %v3900_v13 }
 0x1ad   :  { %3598 = vmatprep.subr.bf16.mxu1 %v3898_v9 }
 0x1b0   :  { %3600 = vmatpush3.bf16.msra.mxu1 %v3998_v12 }
 0x1b1   :  { %3607 = vmatprep.subr.bf16.mxu1 %v3898_v9 }
 0x1b3   :  { %3222 = vmatmul.mubr.msk.f32.vlgmr.msra.gmra.mrb[4].mxu1 %vm184_vm2, %v3802_v61 }
 0x1b4   :  { %3609 = vmatpush3.bf16.msra.mxu1 %v4031_v31  ;;  %3243 = vmatprep.mubr.msk.f32.mxu1 %vm3899_vm0, %v3900_v13 }
 0x1b5   :  { %3610 = vmatprep.subr.bf16.mxu1 %v3898_v9 }
 0x1b8   :  { %3612 = vmatpush3.bf16.msra.mxu1 %v4041_v35 }
 0x1b9   :  { %3619 = vmatprep.subr.bf16.mxu1 %v3898_v9 }
 0x1bb   :  { %3244 = vmatmul.mubr.msk.f32.vlgmr.msra.gmra.mrb[6].mxu1 %vm184_vm2, %v3802_v61 }
 0x1bc   :  { %3265 = vmatprep.mubr.msk.f32.mxu1 %vm3899_vm0, %v3900_v13  ;;  %3621 = vmatpush3.bf16.msra.mxu1 %v4105_v0 }
 0x1bd   :  { %3622 = vmatprep.subr.bf16.mxu1 %v3898_v9 }
 0x1c0   :  { %3624 = vmatpush3.bf16.msra.mxu1 %v4112_v5 }
 0x1c1   :  { %3631 = vmatprep.subr.bf16.mxu1 %v3898_v9 }
 0x276   :  { %v328_v23 = vpop.f32.mrb[0].mxu1 }
 0x277   :  { %v329_v24 = vadd.f32 %v4132_v22, %v328_v23  ;;  %v3179_v25 = vpop.f32.mrb[1].mxu1 }
 0x279   :  { %3803 = vtanh.f32 %v329_v24  ;;  %v1648_v24 = vld [vmem:[#allocation2 + $0x8] sm:$0x3] }
 0x27e   :  { %v469_v26 = vpop.f32.mrb[2].mxu1 }
 0x27f   :  { %v3201_v14 = vpop.f32.mrb[3].mxu1 }
 0x283   :  { %v3804_v27 = vpop.eup %3803 }
 0x284   :  { %3211 = vmatmul.mubr.msk.f32.vlgmr.msra.gmra.mrb[4].mxu0 %vm184_vm2, %v3804_v27 }
 0x285   :  { %3603 = vmatpush3.bf16.msra.mxu0 %v4051_v38  ;;  %3232 = vmatprep.mubr.msk.f32.mxu0 %vm3899_vm0, %v3900_v13 }
 0x286   :  { %v619_v15 = vpop.f32.mrb[4].mxu1  ;;  %3604 = vmatprep.subr.bf16.mxu0 %v3898_v9 }
 0x287   :  { %v620_v28 = vadd.f32 %v619_v15, %v469_v26  ;;  %v3223_v29 = vpop.f32.mrb[5].mxu1 }
 0x289   :  { %v623_v30 = vadd.f32 %v4074_v46, %v620_v28  ;;  %3606 = vmatpush3.bf16.msra.mxu0 %v4055_v41 }
 0x28a   :  { %3613 = vmatprep.subr.bf16.mxu0 %v3898_v9 }
 0x28b   :  { %3805 = vtanh.f32 %v623_v30 }
 0x28e   :  { %v766_v32 = vpop.f32.mrb[6].mxu1 }
 0x28f   :  { %v3245_v33 = vpop.f32.mrb[7].mxu1  ;;  %v915_v37 = vadd.f32 %v914_v34, %v766_v32 }
 0x291   :  { %3807 = vtanh.f32 %v915_v37 }
 0x295   :  { %v3806_v36 = vpop.eup %3805 }
 0x296   :  { %3233 = vmatmul.mubr.msk.f32.vlgmr.msra.gmra.mrb[6].mxu0 %vm184_vm2, %v3806_v36 }
 0x297   :  { %3615 = vmatpush3.bf16.msra.mxu0 %v4077_v54  ;;  %3254 = vmatprep.mubr.msk.f32.mxu0 %vm3899_vm0, %v3900_v13 }
 0x298   :  { %3616 = vmatprep.subr.bf16.mxu0 %v3898_v9 }
 0x29b   :  { %3618 = vmatpush3.bf16.msra.mxu0 %v4081_v60  ;;  %v3808_v39 = vpop.eup %3807 }
 0x29c   :  { %3625 = vmatprep.subr.bf16.mxu0 %v3898_v9 }
 0x29e   :  { %3255 = vmatmul.mubr.msk.f32.vlgmr.msra.gmra.mrb[8].mxu0 %vm184_vm2, %v3806_v36 }
 0x29f   :  { %3627 = vmatpush3.bf16.msra.mxu0 %v3992_v8  ;;  %3276 = vmatprep.mubr.msk.f32.mxu0 %vm3899_vm0, %v3900_v13 }
 0x2a0   :  { %3628 = vmatprep.subr.bf16.mxu0 %v3898_v9 }
 0x2a3   :  { %3630 = vmatpush3.bf16.msra.mxu0 %v3998_v12 }
 0x2a4   :  { %3637 = vmatprep.subr.bf16.mxu0 %v3898_v9 }
 0x2a6   :  { %3277 = vmatmul.mubr.msk.f32.vlgmr.msra.gmra.mrb[10].mxu0 %vm184_vm2, %v3808_v39 }
 0x2a7   :  { %3639 = vmatpush3.bf16.msra.mxu0 %v4031_v31  ;;  %3298 = vmatprep.mubr.msk.f32.mxu0 %vm3899_vm0, %v3900_v13 }
 0x2a8   :  { %3640 = vmatprep.subr.bf16.mxu0 %v3898_v9 }
 0x2ab   :  { %3642 = vmatpush3.bf16.msra.mxu0 %v4041_v35 }
 0x2ac   :  { %3649 = vmatprep.subr.bf16.mxu0 %v3898_v9 }
 0x2ae   :  { %3299 = vmatmul.mubr.msk.f32.vlgmr.msra.gmra.mrb[12].mxu0 %vm184_vm2, %v3808_v39 }
 0x2af   :  { %3651 = vmatpush3.bf16.msra.mxu0 %v4105_v0  ;;  %3320 = vmatprep.mubr.msk.f32.mxu0 %vm3899_vm0, %v3900_v13 }
 0x2b0   :  { %3652 = vmatprep.subr.bf16.mxu0 %v3898_v9 }
 0x2b3   :  { %3654 = vmatpush3.bf16.msra.mxu0 %v4112_v5 }
 0x2b4   :  { %3661 = vmatprep.subr.bf16.mxu0 %v3898_v9 }
 0x357   :  { %v542_v40 = vpop.f32.mrb[4].mxu0 }
 0x358   :  { %v3212_v42 = vpop.f32.mrb[5].mxu0 }
 0x369   :  { %v694_v43 = vpop.f32.mrb[6].mxu0 }
 0x36a   :  { %v695_v44 = vadd.f32 %v694_v43, %v542_v40  ;;  %v3234_v45 = vpop.f32.mrb[7].mxu0 }
 0x36b   :  { %v2015_v45 = vld [vmem:[#allocation2 + $0xa] sm:$0x3] }
 0x36c   :  { %v698_v47 = vadd.f32 %v4132_v22, %v695_v44 }
 0x36e   :  { %3809 = vtanh.f32 %v698_v47 }
 0x371   :  { %v836_v48 = vpop.f32.mrb[8].mxu0 }
 0x372   :  { %v3256_v49 = vpop.f32.mrb[9].mxu0 }
 0x378   :  { %v3810_v50 = vpop.eup %3809 }
 0x379   :  { %v986_v51 = vpop.f32.mrb[10].mxu0  ;;  %3266 = vmatmul.mubr.msk.f32.vlgmr.msra.gmra.mrb[8].mxu1 %vm184_vm2, %v3810_v50 }
 0x37a   :  { %v987_v52 = vadd.f32 %v986_v51, %v836_v48  ;;  %v3278_v53 = vpop.f32.mrb[11].mxu0  ;;  %3633 = vmatpush3.bf16.msra.mxu1 %v4051_v38  ;;  %3287 = vmatprep.mubr.msk.f32.mxu1 %vm3899_vm0, %v3900_v13 }
 0x37b   :  { %3634 = vmatprep.subr.bf16.mxu1 %v3898_v9 }
 0x37c   :  { %v990_v55 = vadd.f32 %v4074_v46, %v987_v52 }
 0x37e   :  { %3811 = vtanh.f32 %v990_v55  ;;  %3636 = vmatpush3.bf16.msra.mxu1 %v4055_v41 }
 0x37f   :  { %3643 = vmatprep.subr.bf16.mxu1 %v3898_v9 }
 0x381   :  { %v1133_v56 = vpop.f32.mrb[12].mxu0 }
 0x382   :  { %v3300_v57 = vpop.f32.mrb[13].mxu0  ;;  %v1282_v61 = vadd.f32 %v1281_v59, %v1133_v56 }
 0x384   :  { %3813 = vtanh.f32 %v1282_v61 }
 0x388   :  { %v3812_v58 = vpop.eup %3811 }
 0x389   :  { %3288 = vmatmul.mubr.msk.f32.vlgmr.msra.gmra.mrb[10].mxu1 %vm184_vm2, %v3812_v58 }
 0x38a   :  { %3645 = vmatpush3.bf16.msra.mxu1 %v4077_v54  ;;  %3309 = vmatprep.mubr.msk.f32.mxu1 %vm3899_vm0, %v3900_v13 }
 0x38b   :  { %3646 = vmatprep.subr.bf16.mxu1 %v3898_v9 }
 0x38e   :  { %3648 = vmatpush3.bf16.msra.mxu1 %v4081_v60  ;;  %v3814_v62 = vpop.eup %3813 }
 0x38f   :  { %3655 = vmatprep.subr.bf16.mxu1 %v3898_v9 }
 0x391   :  { %3310 = vmatmul.mubr.msk.f32.vlgmr.msra.gmra.mrb[12].mxu1 %vm184_vm2, %v3812_v58 }
 0x392   :  { %3657 = vmatpush3.bf16.msra.mxu1 %v3992_v8  ;;  %3331 = vmatprep.mubr.msk.f32.mxu1 %vm3899_vm0, %v3900_v13 }
 0x393   :  { %3658 = vmatprep.subr.bf16.mxu1 %v3898_v9 }
 0x396   :  { %3660 = vmatpush3.bf16.msra.mxu1 %v3998_v12 }
 0x397   :  { %3667 = vmatprep.subr.bf16.mxu1 %v3898_v9 }
 0x399   :  { %3332 = vmatmul.mubr.msk.f32.vlgmr.msra.gmra.mrb[14].mxu1 %vm184_vm2, %v3814_v62 }
 0x39a   :  { %3669 = vmatpush3.bf16.msra.mxu1 %v4031_v31  ;;  %3353 = vmatprep.mubr.msk.f32.mxu1 %vm3899_vm0, %v3900_v13 }
 0x39b   :  { %3670 = vmatprep.subr.bf16.mxu1 %v3898_v9 }
 0x39e   :  { %3672 = vmatpush3.bf16.msra.mxu1 %v4041_v35 }
 0x39f   :  { %3679 = vmatprep.subr.bf16.mxu1 %v3898_v9 }
 0x3a1   :  { %3354 = vmatmul.mubr.msk.f32.vlgmr.msra.gmra.mrb[16].mxu1 %vm184_vm2, %v3814_v62 }
 0x3a2   :  { %3681 = vmatpush3.bf16.msra.mxu1 %v4105_v0  ;;  %3375 = vmatprep.mubr.msk.f32.mxu1 %vm3899_vm0, %v3900_v13 }
 0x3a3   :  { %3682 = vmatprep.subr.bf16.mxu1 %v3898_v9 }
 0x3a6   :  { %3684 = vmatpush3.bf16.msra.mxu1 %v4112_v5 }
 0x3a7   :  { %3691 = vmatprep.subr.bf16.mxu1 %v3898_v9 }
 0x44c   :  { %v909_v63 = vpop.f32.mrb[8].mxu1 }
 0x44d   :  { %v3267_v1 = vpop.f32.mrb[9].mxu1 }
 0x45c   :  { %v1061_v2 = vpop.f32.mrb[10].mxu1 }
 0x45d   :  { %v1062_v3 = vadd.f32 %v1061_v2, %v909_v63  ;;  %v3289_v4 = vpop.f32.mrb[11].mxu1 }
 0x45e   :  { %v2382_v4 = vld [vmem:[#allocation2 + $0xc] sm:$0x3] }
 0x45f   :  { %v1065_v6 = vadd.f32 %v4132_v22, %v1062_v3 }
 0x461   :  { %3815 = vtanh.f32 %v1065_v6 }
 0x464   :  { %v1203_v7 = vpop.f32.mrb[12].mxu1 }
 0x465   :  { %v3311_v10 = vpop.f32.mrb[13].mxu1 }
 0x46b   :  { %v3816_v11 = vpop.eup %3815 }
 0x46c   :  { %v1353_v16 = vpop.f32.mrb[14].mxu1  ;;  %3321 = vmatmul.mubr.msk.f32.vlgmr.msra.gmra.mrb[14].mxu0 %vm184_vm2, %v3816_v11 }
 0x46d   :  { %v1354_v17 = vadd.f32 %v1353_v16, %v1203_v7  ;;  %v3333_v18 = vpop.f32.mrb[15].mxu1  ;;  %3663 = vmatpush3.bf16.msra.mxu0 %v4051_v38  ;;  %3342 = vmatprep.mubr.msk.f32.mxu0 %vm3899_vm0, %v3900_v13 }
 0x46e   :  { %3664 = vmatprep.subr.bf16.mxu0 %v3898_v9 }
 0x46f   :  { %v1357_v19 = vadd.f32 %v4074_v46, %v1354_v17 }
 0x471   :  { %3817 = vtanh.f32 %v1357_v19  ;;  %3666 = vmatpush3.bf16.msra.mxu0 %v4055_v41 }
 0x472   :  { %3673 = vmatprep.subr.bf16.mxu0 %v3898_v9 }
 0x474   :  { %v1500_v20 = vpop.f32.mrb[16].mxu1 }
 0x475   :  { %v3355_v21 = vpop.f32.mrb[17].mxu1  ;;  %v1649_v25 = vadd.f32 %v1648_v24, %v1500_v20 }
 0x477   :  { %3819 = vtanh.f32 %v1649_v25 }
 0x47b   :  { %v3818_v23 = vpop.eup %3817 }
 0x47c   :  { %3343 = vmatmul.mubr.msk.f32.vlgmr.msra.gmra.mrb[16].mxu0 %vm184_vm2, %v3818_v23 }
 0x47d   :  { %3675 = vmatpush3.bf16.msra.mxu0 %v4077_v54  ;;  %3364 = vmatprep.mubr.msk.f32.mxu0 %vm3899_vm0, %v3900_v13 }
 0x47e   :  { %3676 = vmatprep.subr.bf16.mxu0 %v3898_v9 }
 0x481   :  { %3678 = vmatpush3.bf16.msra.mxu0 %v4081_v60  ;;  %v3820_v26 = vpop.eup %3819 }
 0x482   :  { %3685 = vmatprep.subr.bf16.mxu0 %v3898_v9 }
 0x484   :  { %3365 = vmatmul.mubr.msk.f32.vlgmr.msra.gmra.mrb[18].mxu0 %vm184_vm2, %v3818_v23 }
 0x485   :  { %3687 = vmatpush3.bf16.msra.mxu0 %v3992_v8  ;;  %3386 = vmatprep.mubr.msk.f32.mxu0 %vm3899_vm0, %v3900_v13 }
 0x486   :  { %3688 = vmatprep.subr.bf16.mxu0 %v3898_v9 }
 0x489   :  { %3690 = vmatpush3.bf16.msra.mxu0 %v3998_v12 }
 0x48a   :  { %3697 = vmatprep.subr.bf16.mxu0 %v3898_v9 }
 0x48c   :  { %3387 = vmatmul.mubr.msk.f32.vlgmr.msra.gmra.mrb[20].mxu0 %vm184_vm2, %v3820_v26 }
 0x48d   :  { %3699 = vmatpush3.bf16.msra.mxu0 %v4031_v31  ;;  %3408 = vmatprep.mubr.msk.f32.mxu0 %vm3899_vm0, %v3900_v13 }
 0x48e   :  { %3700 = vmatprep.subr.bf16.mxu0 %v3898_v9 }
 0x491   :  { %3702 = vmatpush3.bf16.msra.mxu0 %v4041_v35 }
 0x492   :  { %3709 = vmatprep.subr.bf16.mxu0 %v3898_v9 }
 0x494   :  { %3409 = vmatmul.mubr.msk.f32.vlgmr.msra.gmra.mrb[22].mxu0 %vm184_vm2, %v3820_v26 }
 0x495   :  { %3711 = vmatpush3.bf16.msra.mxu0 %v4105_v0  ;;  %3430 = vmatprep.mubr.msk.f32.mxu0 %vm3899_vm0, %v3900_v13 }
 0x496   :  { %3712 = vmatprep.subr.bf16.mxu0 %v3898_v9 }
 0x499   :  { %3714 = vmatpush3.bf16.msra.mxu0 %v4112_v5 }
 0x49a   :  { %3721 = vmatprep.subr.bf16.mxu0 %v3898_v9 }
 0x53f   :  { %v1276_v14 = vpop.f32.mrb[14].mxu0 }
 0x540   :  { %v3322_v27 = vpop.f32.mrb[15].mxu0 }
 0x54f   :  { %v1428_v15 = vpop.f32.mrb[16].mxu0 }
 0x550   :  { %v1429_v28 = vadd.f32 %v1428_v15, %v1276_v14  ;;  %v3344_v29 = vpop.f32.mrb[17].mxu0  ;;  %v2749_v14 = vld [vmem:[#allocation2 + $0xe] sm:$0x3] }
 0x552   :  { %v1432_v30 = vadd.f32 %v4132_v22, %v1429_v28 }
 0x554   :  { %3821 = vtanh.f32 %v1432_v30 }
 0x557   :  { %v1570_v32 = vpop.f32.mrb[18].mxu0 }
 0x558   :  { %v3366_v33 = vpop.f32.mrb[19].mxu0 }
 0x55e   :  { %v3822_v34 = vpop.eup %3821 }
 0x55f   :  { %v1720_v36 = vpop.f32.mrb[20].mxu0  ;;  %3376 = vmatmul.mubr.msk.f32.vlgmr.msra.gmra.mrb[18].mxu1 %vm184_vm2, %v3822_v34 }
 0x560   :  { %v1721_v37 = vadd.f32 %v1720_v36, %v1570_v32  ;;  %v3388_v39 = vpop.f32.mrb[21].mxu0  ;;  %3693 = vmatpush3.bf16.msra.mxu1 %v4051_v38  ;;  %3397 = vmatprep.mubr.msk.f32.mxu1 %vm3899_vm0, %v3900_v13 }
 0x561   :  { %3694 = vmatprep.subr.bf16.mxu1 %v3898_v9 }
 0x562   :  { %v1724_v40 = vadd.f32 %v4074_v46, %v1721_v37 }
 0x564   :  { %3823 = vtanh.f32 %v1724_v40  ;;  %3696 = vmatpush3.bf16.msra.mxu1 %v4055_v41 }
 0x565   :  { %3703 = vmatprep.subr.bf16.mxu1 %v3898_v9 }
 0x567   :  { %v1867_v42 = vpop.f32.mrb[22].mxu0 }
 0x568   :  { %v3410_v43 = vpop.f32.mrb[23].mxu0  ;;  %v2016_v47 = vadd.f32 %v2015_v45, %v1867_v42 }
 0x56a   :  { %3825 = vtanh.f32 %v2016_v47 }
 0x56e   :  { %v3824_v44 = vpop.eup %3823 }
 0x56f   :  { %3398 = vmatmul.mubr.msk.f32.vlgmr.msra.gmra.mrb[20].mxu1 %vm184_vm2, %v3824_v44 }
 0x570   :  { %3705 = vmatpush3.bf16.msra.mxu1 %v4077_v54  ;;  %3419 = vmatprep.mubr.msk.f32.mxu1 %vm3899_vm0, %v3900_v13 }
 0x571   :  { %3706 = vmatprep.subr.bf16.mxu1 %v3898_v9 }
 0x574   :  { %3708 = vmatpush3.bf16.msra.mxu1 %v4081_v60  ;;  %v3826_v48 = vpop.eup %3825 }
 0x575   :  { %3715 = vmatprep.subr.bf16.mxu1 %v3898_v9 }
 0x577   :  { %3420 = vmatmul.mubr.msk.f32.vlgmr.msra.gmra.mrb[22].mxu1 %vm184_vm2, %v3824_v44 }
 0x578   :  { %3717 = vmatpush3.bf16.msra.mxu1 %v3992_v8  ;;  %3441 = vmatprep.mubr.msk.f32.mxu1 %vm3899_vm0, %v3900_v13 }
 0x579   :  { %3718 = vmatprep.subr.bf16.mxu1 %v3898_v9 }
 0x57c   :  { %3720 = vmatpush3.bf16.msra.mxu1 %v3998_v12 }
 0x57d   :  { %3727 = vmatprep.subr.bf16.mxu1 %v3898_v9 }
 0x57f   :  { %3442 = vmatmul.mubr.msk.f32.vlgmr.msra.gmra.mrb[24].mxu1 %vm184_vm2, %v3826_v48 }
 0x580   :  { %3729 = vmatpush3.bf16.msra.mxu1 %v4031_v31  ;;  %3463 = vmatprep.mubr.msk.f32.mxu1 %vm3899_vm0, %v3900_v13 }
 0x581   :  { %3730 = vmatprep.subr.bf16.mxu1 %v3898_v9 }
 0x584   :  { %3732 = vmatpush3.bf16.msra.mxu1 %v4041_v35 }
 0x585   :  { %3739 = vmatprep.subr.bf16.mxu1 %v3898_v9 }
 0x587   :  { %3464 = vmatmul.mubr.msk.f32.vlgmr.msra.gmra.mrb[26].mxu1 %vm184_vm2, %v3826_v48 }
 0x588   :  { %3741 = vmatpush3.bf16.msra.mxu1 %v4105_v0  ;;  %3485 = vmatprep.mubr.msk.f32.mxu1 %vm3899_vm0, %v3900_v13 }
 0x589   :  { %3742 = vmatprep.subr.bf16.mxu1 %v3898_v9 }
 0x58c   :  { %3744 = vmatpush3.bf16.msra.mxu1 %v4112_v5 }
 0x58d   :  { %3751 = vmatprep.subr.bf16.mxu1 %v3898_v9 }
 0x632   :  { %v1643_v49 = vpop.f32.mrb[18].mxu1 }
 0x633   :  { %v3377_v50 = vpop.f32.mrb[19].mxu1 }
 0x642   :  { %v1795_v51 = vpop.f32.mrb[20].mxu1 }
 0x643   :  { %v1796_v52 = vadd.f32 %v1795_v51, %v1643_v49  ;;  %v3399_v53 = vpop.f32.mrb[21].mxu1 }
 0x645   :  { %v1799_v55 = vadd.f32 %v4132_v22, %v1796_v52 }
 0x647   :  { %3827 = vtanh.f32 %v1799_v55 }
 0x64a   :  { %v1937_v56 = vpop.f32.mrb[22].mxu1 }
 0x64b   :  { %v3421_v57 = vpop.f32.mrb[23].mxu1 }
 0x651   :  { %v3828_v58 = vpop.eup %3827 }
 0x652   :  { %v2087_v59 = vpop.f32.mrb[24].mxu1  ;;  %3431 = vmatmul.mubr.msk.f32.vlgmr.msra.gmra.mrb[24].mxu0 %vm184_vm2, %v3828_v58 }
 0x653   :  { %v2088_v61 = vadd.f32 %v2087_v59, %v1937_v56  ;;  %v3443_v62 = vpop.f32.mrb[25].mxu1  ;;  %3723 = vmatpush3.bf16.msra.mxu0 %v4051_v38  ;;  %3452 = vmatprep.mubr.msk.f32.mxu0 %vm3899_vm0, %v3900_v13 }
 0x654   :  { %3724 = vmatprep.subr.bf16.mxu0 %v3898_v9 }
 0x655   :  { %v2091_v63 = vadd.f32 %v4074_v46, %v2088_v61 }
 0x657   :  { %3829 = vtanh.f32 %v2091_v63  ;;  %3726 = vmatpush3.bf16.msra.mxu0 %v4055_v41 }
 0x658   :  { %3733 = vmatprep.subr.bf16.mxu0 %v3898_v9 }
 0x65a   :  { %v2234_v1 = vpop.f32.mrb[26].mxu1 }
 0x65b   :  { %v3465_v2 = vpop.f32.mrb[27].mxu1  ;;  %v2383_v6 = vadd.f32 %v2382_v4, %v2234_v1 }
 0x65d   :  { %3831 = vtanh.f32 %v2383_v6 }
 0x661   :  { %v3830_v3 = vpop.eup %3829 }
 0x662   :  { %3453 = vmatmul.mubr.msk.f32.vlgmr.msra.gmra.mrb[26].mxu0 %vm184_vm2, %v3830_v3 }
 0x663   :  { %3735 = vmatpush3.bf16.msra.mxu0 %v4077_v54  ;;  %3474 = vmatprep.mubr.msk.f32.mxu0 %vm3899_vm0, %v3900_v13 }
 0x664   :  { %3736 = vmatprep.subr.bf16.mxu0 %v3898_v9 }
 0x667   :  { %3738 = vmatpush3.bf16.msra.mxu0 %v4081_v60  ;;  %v3832_v7 = vpop.eup %3831 }
 0x668   :  { %3745 = vmatprep.subr.bf16.mxu0 %v3898_v9 }
 0x66a   :  { %3475 = vmatmul.mubr.msk.f32.vlgmr.msra.gmra.mrb[28].mxu0 %vm184_vm2, %v3830_v3 }
 0x66b   :  { %3747 = vmatpush3.bf16.msra.mxu0 %v3992_v8  ;;  %3496 = vmatprep.mubr.msk.f32.mxu0 %vm3899_vm0, %v3900_v13 }
 0x66c   :  { %3748 = vmatprep.subr.bf16.mxu0 %v3898_v9 }
 0x66f   :  { %3750 = vmatpush3.bf16.msra.mxu0 %v3998_v12 }
 0x670   :  { %3757 = vmatprep.subr.bf16.mxu0 %v3898_v9 }
 0x672   :  { %3497 = vmatmul.mubr.msk.f32.vlgmr.msra.gmra.mrb[30].mxu0 %vm184_vm2, %v3832_v7 }
 0x673   :  { %3759 = vmatpush3.bf16.msra.mxu0 %v4031_v31  ;;  %3518 = vmatprep.mubr.msk.f32.mxu0 %vm3899_vm0, %v3900_v13 }
 0x674   :  { %3760 = vmatprep.subr.bf16.mxu0 %v3898_v9 }
 0x677   :  { %3762 = vmatpush3.bf16.msra.mxu0 %v4041_v35 }
 0x678   :  { %3769 = vmatprep.subr.bf16.mxu0 %v3898_v9 }
 0x67a   :  { %3519 = vmatmul.mubr.msk.f32.vlgmr.msra.gmra.mrb[32].mxu0 %vm184_vm2, %v3832_v7 }
 0x67b   :  { %3771 = vmatpush3.bf16.msra.mxu0 %v4105_v0  ;;  %3540 = vmatprep.mubr.msk.f32.mxu0 %vm3899_vm0, %v3900_v13 }
 0x67c   :  { %3772 = vmatprep.subr.bf16.mxu0 %v3898_v9 }
 0x67f   :  { %3774 = vmatpush3.bf16.msra.mxu0 %v4112_v5 }
 0x680   :  { %3781 = vmatprep.subr.bf16.mxu0 %v3898_v9 }
 0x725   :  { %v2010_v31 = vpop.f32.mrb[24].mxu0 }
 0x726   :  { %v3432_v10 = vpop.f32.mrb[25].mxu0 }
 0x735   :  { %v2162_v11 = vpop.f32.mrb[26].mxu0 }
 0x736   :  { %v2163_v16 = vadd.f32 %v2162_v11, %v2010_v31  ;;  %v3454_v35 = vpop.f32.mrb[27].mxu0 }
 0x738   :  { %v2166_v17 = vadd.f32 %v4132_v22, %v2163_v16 }
 0x73a   :  { %3833 = vtanh.f32 %v2166_v17 }
 0x73d   :  { %v2304_v18 = vpop.f32.mrb[28].mxu0 }
 0x73e   :  { %v3476_v19 = vpop.f32.mrb[29].mxu0 }
 0x744   :  { %v3834_v0 = vpop.eup %3833 }
 0x745   :  { %v2454_v20 = vpop.f32.mrb[30].mxu0  ;;  %3486 = vmatmul.mubr.msk.f32.vlgmr.msra.gmra.mrb[28].mxu1 %vm184_vm2, %v3834_v0 }
 0x746   :  { %v2455_v21 = vadd.f32 %v2454_v20, %v2304_v18  ;;  %v3498_v23 = vpop.f32.mrb[31].mxu0  ;;  %3753 = vmatpush3.bf16.msra.mxu1 %v4051_v38  ;;  %3507 = vmatprep.mubr.msk.f32.mxu1 %vm3899_vm0, %v3900_v13 }
 0x747   :  { %3754 = vmatprep.subr.bf16.mxu1 %v3898_v9 }
 0x748   :  { %v2458_v5 = vadd.f32 %v4074_v46, %v2455_v21 }
 0x74a   :  { %3835 = vtanh.f32 %v2458_v5  ;;  %3756 = vmatpush3.bf16.msra.mxu1 %v4055_v41 }
 0x74b   :  { %3763 = vmatprep.subr.bf16.mxu1 %v3898_v9 }
 0x74d   :  { %v2601_v24 = vpop.f32.mrb[32].mxu0 }
 0x74e   :  { %v3520_v25 = vpop.f32.mrb[33].mxu0  ;;  %v2750_v27 = vadd.f32 %v2749_v14, %v2601_v24 }
 0x750   :  { %3837 = vtanh.f32 %v2750_v27 }
 0x754   :  { %v3836_v26 = vpop.eup %3835 }
 0x755   :  { %3508 = vmatmul.mubr.msk.f32.vlgmr.msra.gmra.mrb[30].mxu1 %vm184_vm2, %v3836_v26 }
 0x756   :  { %3765 = vmatpush3.bf16.msra.mxu1 %v4077_v54  ;;  %3529 = vmatprep.mubr.msk.f32.mxu1 %vm3899_vm0, %v3900_v13 }
 0x757   :  { %3766 = vmatprep.subr.bf16.mxu1 %v3898_v9 }
 0x75a   :  { %3768 = vmatpush3.bf16.msra.mxu1 %v4081_v60  ;;  %v3838_v54 = vpop.eup %3837 }
 0x75b   :  { %3775 = vmatprep.subr.bf16.mxu1 %v3898_v9 }
 0x75d   :  { %3530 = vmatmul.mubr.msk.f32.vlgmr.msra.gmra.mrb[32].mxu1 %vm184_vm2, %v3836_v26 }
 0x75e   :  { %3777 = vmatpush3.bf16.msra.mxu1 %v3992_v8  ;;  %3551 = vmatprep.mubr.msk.f32.mxu1 %vm3899_vm0, %v3900_v13 }
 0x75f   :  { %3778 = vmatprep.subr.bf16.mxu1 %v3898_v9 }
 0x762   :  { %3780 = vmatpush3.bf16.msra.mxu1 %v3998_v12 }
 0x765   :  { %3552 = vmatmul.mubr.msk.f32.vlgmr.msra.gmra.mrb[34].mxu1 %vm184_vm2, %v3838_v54 }
 0x818   :  { %v2377_v15 = vpop.f32.mrb[28].mxu1 }
 0x819   :  { %v3487_v28 = vpop.f32.mrb[29].mxu1 }
 0x828   :  { %v2529_v29 = vpop.f32.mrb[30].mxu1 }
 0x829   :  { %v2530_v60 = vadd.f32 %v2529_v29, %v2377_v15  ;;  %v3509_v30 = vpop.f32.mrb[31].mxu1 }
 0x82b   :  { %v2533_v32 = vadd.f32 %v4132_v22, %v2530_v60 }
 0x82d   :  { %3839 = vtanh.f32 %v2533_v32 }
 0x830   :  { %v2671_v33 = vpop.f32.mrb[32].mxu1 }
 0x831   :  { %v3531_v8 = vpop.f32.mrb[33].mxu1 }
 0x837   :  { %v3840_v34 = vpop.eup %3839 }
 0x838   :  { %v2821_v36 = vpop.f32.mrb[34].mxu1  ;;  %3541 = vmatmul.mubr.msk.f32.vlgmr.msra.gmra.mrb[34].mxu0 %vm184_vm2, %v3840_v34 }
 0x839   :  { %v2822_v37 = vadd.f32 %v2821_v36, %v2671_v33  ;;  %v3553_v39 = vpop.f32.mrb[35].mxu1  ;;  %3783 = vmatpush3.bf16.msra.mxu0 %v4051_v38  ;;  %3562 = vmatprep.mubr.msk.f32.mxu0 %vm3899_vm0, %v3900_v13 }
 0x83a   :  { %3784 = vmatprep.subr.bf16.mxu0 %v3898_v9  ;;  %v2971_v9 = vld [vmem:[%s4365_s6] ss:$0 sm:$0xff] }
 0x83b   :  { %v2825_v12 = vadd.f32 %v4074_v46, %v2822_v37 }
 0x83d   :  { %3841 = vtanh.f32 %v2825_v12  ;;  %3786 = vmatpush3.bf16.msra.mxu0 %v4055_v41  ;;  %v2972_v41 = vld [vmem:[#allocation3] ss:$0 sm:$0xff] }
 0x847   :  { %v3842_v40 = vpop.eup %3841 }
 0x848   :  { %3563 = vmatmul.mubr.msk.f32.vlgmr.msra.gmra.mrb[36].mxu0 %vm184_vm2, %v3842_v40 }
 0x90b   :  { %v2744_v42 = vpop.f32.mrb[34].mxu0 }
 0x90c   :  { %v3542_v43 = vpop.f32.mrb[35].mxu0 }
 0x91b   :  { %v2896_v44 = vpop.f32.mrb[36].mxu0 }
 0x91c   :  { %v2897_v45 = vadd.f32 %v2896_v44, %v2744_v42  ;;  %v3564_v47 = vpop.f32.mrb[37].mxu0 }
 0x91e   :  { %v2900_v38 = vadd.f32 %v4132_v22, %v2897_v45 }
 0x920   :  { %3843 = vtanh.f32 %v2900_v38 }
 0x92a   :  { %v3844_v13 = vpop.eup %3843 }
 0x92b   :  { %v2909_v46 = vmul.f32 %v3844_v13, %v2971_v9 }
 0x92d   :  { %v2910_v48 = vsel %vm135_vm1, %v2909_v46, 0.0 }
 0x92e   :  { %2911 = vadd.xlane.f32.xlu0 %v2910_v48 }
 0x9bb   :  { %v2912_v49 = vpop.xlane.xlu0 %2911 }
 0x9bc   :  { %v2920_v50 = vadd.f32 %v2972_v41, %v2912_v49 }
 0x9be   :  { %2922 = vst.msk [vmem:[%s4367_s8] sm:$0x3] %vm2921_vm3, %v2920_v50 }
 0x9bf   :  { %2927 = vsyncpa [#allocation5], 1 }
 0x9c0   :  { %2928 = vsyncpa [#allocation7], 1 }

</bundles_post_ra>
